<compile_context>
chip_gen: v6e
topology: v6e:2x2x1
jax: 0.10.0
libtpu: 0.0.40
codegen_flags: <defaults>
</compile_context>

<pallas_src>
import math
import functools

import jax
import jax.numpy as jnp
from jax.experimental import pallas as pl
from jax.experimental.pallas import tpu as pltpu


# ------------------------------- fused kernel ------------------------------ #

def _transformer_kernel(
        x_ref, pe_ref, emb_w_ref, emb_b_ref,
        wqkv_ref, bqkv_ref, wo_ref, bo_ref,
        w1_ref, b1_ref, w2_ref, b2_ref,
        g1_ref, be1_ref, g2_ref, be2_ref,
        out_ref, h_ref,
        *, d_model, nhead, eps):
    seq = h_ref.shape[0]
    hd = d_model // nhead
    layer = pl.program_id(1)

    # ---- embedding * sqrt(d_model) + positional encoding (first layer only) --
    @pl.when(layer == 0)
    def _():
        e = jnp.dot(x_ref[0], emb_w_ref[...],
                    preferred_element_type=jnp.float32)
        e = (e + emb_b_ref[...]) * math.sqrt(d_model) + pe_ref[...]
        h_ref[...] = e
        # TODO(synk): PE / attention / FFN dropouts are eval-mode identity here.

    h = h_ref[...]                                              # (S, D)

    # ---- multi-head self-attention (fused QKV; head-merge fused into Wo) -----
    qkv = jnp.dot(h, wqkv_ref[0],
                  preferred_element_type=jnp.float32) + bqkv_ref[0]   # (S, 3D)
    wo = wo_ref[0]                                              # (D, D)
    scale = 1.0 / math.sqrt(hd)
    attn = jnp.zeros((seq, d_model), jnp.float32)
    for hh in range(nhead):                                     # static unroll
        q = qkv[:, hh * hd:(hh + 1) * hd]                       # (S, hd)
        k = qkv[:, d_model + hh * hd:d_model + (hh + 1) * hd]
        v = qkv[:, 2 * d_model + hh * hd:2 * d_model + (hh + 1) * hd]
        # q @ k^T without an explicit transpose: contract the last axes.
        s = jax.lax.dot_general(q, k, (((1,), (1,)), ((), ())),
                                preferred_element_type=jnp.float32) * scale
        m = jnp.max(s, axis=-1, keepdims=True)
        p = jnp.exp(s - m)
        p = p * pl.reciprocal(jnp.sum(p, axis=-1, keepdims=True), approx=True)
        o = jnp.dot(p, v, preferred_element_type=jnp.float32)   # (S, hd)
        # concat(heads) @ Wo  ==  sum_h  o_h @ Wo[h*hd:(h+1)*hd, :]
        attn = attn + jnp.dot(o, wo[hh * hd:(hh + 1) * hd, :],
                              preferred_element_type=jnp.float32)
    attn = attn + bo_ref[0]

    def add_ln(x, r, g, b):
        y = x + r
        mean = jnp.mean(y, axis=-1, keepdims=True)
        yc = y - mean
        var = jnp.mean(yc * yc, axis=-1, keepdims=True)
        return yc * jax.lax.rsqrt(var + eps) * g + b

    h1 = add_ln(h, attn, g1_ref[0], be1_ref[0])                 # post-norm 1

    # ---- feed forward (ReLU) -------------------------------------------------
    f = jnp.dot(h1, w1_ref[0], preferred_element_type=jnp.float32) + b1_ref[0]
    f = jnp.maximum(f, 0.0)
    f = jnp.dot(f, w2_ref[0], preferred_element_type=jnp.float32) + b2_ref[0]
    h2 = add_ln(h1, f, g2_ref[0], be2_ref[0])                   # post-norm 2

    h_ref[...] = h2

    # ---- last encoder layer: emit outputs[-1, env, :] ------------------------
    @pl.when(layer == pl.num_programs(1) - 1)
    def _():
        out_ref[0] = h2[seq - 1:seq, :]


# ------------------------------ model glue (JAX) --------------------------- #

def sinusoidal_pe(max_len, d_model):
    position = jnp.arange(max_len, dtype=jnp.float32)[:, None]
    div_term = jnp.exp(
        jnp.arange(0, d_model, 2, dtype=jnp.float32)
        * (-math.log(10000.0) / d_model))
    pe = jnp.zeros((max_len, d_model), jnp.float32)
    pe = pe.at[:, 0::2].set(jnp.sin(position * div_term))
    pe = pe.at[:, 1::2].set(jnp.cos(position * div_term))
    return pe


def _lin_init(key, fan_in, fan_out):
    k1, k2 = jax.random.split(key)
    bound = 1.0 / math.sqrt(fan_in)
    w = jax.random.uniform(k1, (fan_in, fan_out), jnp.float32, -bound, bound)
    b = jax.random.uniform(k2, (1, fan_out), jnp.float32, -bound, bound)
    return w, b


def init_params(key, input_dim, d_model, dim_feedforward, layer_num):
    keys = jax.random.split(key, 1 + layer_num)
    emb_w, emb_b = _lin_init(keys[0], input_dim, d_model)
    wqkv, bqkv, wo, bo, w1, b1, w2, b2 = ([] for _ in range(8))
    for li in range(layer_num):
        lk = jax.random.split(keys[1 + li], 6)
        wq, bq = _lin_init(lk[0], d_model, d_model)
        wk, bk = _lin_init(lk[1], d_model, d_model)
        wv, bv = _lin_init(lk[2], d_model, d_model)
        wqkv.append(jnp.concatenate([wq, wk, wv], axis=1))      # (D, 3D)
        bqkv.append(jnp.concatenate([bq, bk, bv], axis=1))      # (1, 3D)
        _wo, _bo = _lin_init(lk[3], d_model, d_model)
        _w1, _b1 = _lin_init(lk[4], d_model, dim_feedforward)
        _w2, _b2 = _lin_init(lk[5], dim_feedforward, d_model)
        wo.append(_wo); bo.append(_bo)
        w1.append(_w1); b1.append(_b1)
        w2.append(_w2); b2.append(_b2)
    ones = jnp.ones((layer_num, 1, d_model), jnp.float32)
    zeros = jnp.zeros((layer_num, 1, d_model), jnp.float32)
    return dict(
        emb_w=emb_w, emb_b=emb_b,
        wqkv=jnp.stack(wqkv), bqkv=jnp.stack(bqkv),
        wo=jnp.stack(wo), bo=jnp.stack(bo),
        w1=jnp.stack(w1), b1=jnp.stack(b1),
        w2=jnp.stack(w2), b2=jnp.stack(b2),
        ln1_g=ones, ln1_b=zeros, ln2_g=ones, ln2_b=zeros,
    )


def transformer_forward(obs, params, cfg):
    num_env = cfg["num_env"]
    input_dim = cfg["input_dim"]
    d_model = cfg["d_model"]
    nhead = cfg["nhead"]
    layer_num = cfg["layer_num"]

    # obs.reshape(-1, num_env, input_dim) -> (S, B, in); go batch-major once so
    # each env's token block is contiguous inside the kernel (tiny one-time op).
    x = obs.reshape(-1, num_env, input_dim)
    seq = x.shape[0]
    xb = jnp.transpose(x, (1, 0, 2))                            # (B, S, in)

    pe = sinusoidal_pe(cfg["max_len"], d_model)[:seq]           # (S, D)

    kernel = functools.partial(_transformer_kernel, d_model=d_model,
                               nhead=nhead, eps=1e-5)

    def fixed(shape):                        # same block every grid step
        return pl.BlockSpec(shape, lambda b, l: (0,) * len(shape))

    def per_layer(arr):                      # one layer slice per inner step
        return pl.BlockSpec((1,) + arr.shape[1:],
                            lambda b, l: (l,) + (0,) * (arr.ndim - 1))

    out = pl.pallas_call(
        kernel,
        out_shape=jax.ShapeDtypeStruct((num_env, 1, d_model), jnp.float32),
        grid_spec=pltpu.PrefetchScalarGridSpec(
            num_scalar_prefetch=0,
            grid=(num_env, layer_num),
            in_specs=[
                pl.BlockSpec((1, seq, input_dim), lambda b, l: (b, 0, 0)),  # x
                fixed(pe.shape),                                            # pe
                fixed(params["emb_w"].shape),
                fixed(params["emb_b"].shape),
                per_layer(params["wqkv"]),
                per_layer(params["bqkv"]),
                per_layer(params["wo"]),
                per_layer(params["bo"]),
                per_layer(params["w1"]),
                per_layer(params["b1"]),
                per_layer(params["w2"]),
                per_layer(params["b2"]),
                per_layer(params["ln1_g"]),
                per_layer(params["ln1_b"]),
                per_layer(params["ln2_g"]),
                per_layer(params["ln2_b"]),
            ],
            out_specs=pl.BlockSpec((1, 1, d_model), lambda b, l: (b, 0, 0)),
            scratch_shapes=[pltpu.VMEM((seq, d_model), jnp.float32)],
        ),
        compiler_params=pltpu.CompilerParams(
            dimension_semantics=("parallel", "arbitrary")),
    )(xb, pe, params["emb_w"], params["emb_b"],
      params["wqkv"], params["bqkv"], params["wo"], params["bo"],
      params["w1"], params["b1"], params["w2"], params["b2"],
      params["ln1_g"], params["ln1_b"], params["ln2_g"], params["ln2_b"])

    return out[:, 0, :]                                          # (num_env, D)


# ------------------------- pure-JAX reference (check) ----------------------- #

def reference_forward(obs, params, cfg):
    num_env = cfg["num_env"]
    input_dim = cfg["input_dim"]
    d_model = cfg["d_model"]
    nhead = cfg["nhead"]
    hd = d_model // nhead
    x = obs.reshape(-1, num_env, input_dim)                      # (S, B, in)
    seq = x.shape[0]
    pe = sinusoidal_pe(cfg["max_len"], d_model)[:seq]
    h = (jnp.einsum('sbi,ij->sbj', x, params["emb_w"]) + params["emb_b"])
    h = h * math.sqrt(d_model) + pe[:, None, :]

    def ln(y, g, b):
        m = jnp.mean(y, -1, keepdims=True)
        v = jnp.mean((y - m) ** 2, -1, keepdims=True)
        return (y - m) / jnp.sqrt(v + 1e-5) * g + b

    def heads(t):                                                # -> (B,H,S,hd)
        return t.reshape(seq, num_env, nhead, hd).transpose(1, 2, 0, 3)

    for l in range(params["wqkv"].shape[0]):
        qkv = jnp.einsum('sbd,de->sbe', h, params["wqkv"][l]) + params["bqkv"][l]
        q, k, v = (qkv[..., :d_model], qkv[..., d_model:2 * d_model],
                   qkv[..., 2 * d_model:])
        s = jnp.einsum('bhqd,bhkd->bhqk', heads(q), heads(k)) / math.sqrt(hd)
        p = jax.nn.softmax(s, axis=-1)
        o = jnp.einsum('bhqk,bhkd->bhqd', p, heads(v))
        o = o.transpose(2, 0, 1, 3).reshape(seq, num_env, d_model)
        a = jnp.einsum('sbd,de->sbe', o, params["wo"][l]) + params["bo"][l]
        h = ln(h + a, params["ln1_g"][l], params["ln1_b"][l])
        f = jnp.maximum(
            jnp.einsum('sbd,df->sbf', h, params["w1"][l]) + params["b1"][l], 0.0)
        f = jnp.einsum('sbf,fd->sbd', f, params["w2"][l]) + params["b2"][l]
        h = ln(h + f, params["ln2_g"][l], params["ln2_b"][l])
    return h[-1]


# ----------------------------------- main ----------------------------------- #

if __name__ == "__main__":
    cfg = dict(
        input_dim=16, d_model=32, nhead=2, dim_feedforward=64,
        layer_num=2, num_env=2, max_len=8,
    )
    seq = cfg["max_len"]

    key = jax.random.PRNGKey(0)
    kp, kx = jax.random.split(key)
    params = init_params(kp, cfg["input_dim"], cfg["d_model"],
                         cfg["dim_feedforward"], cfg["layer_num"])

    # obs: (seq * num_env, input_dim), reshapeable to (-1, num_env, input_dim)
    obs = jax.random.normal(
        kx, (seq * cfg["num_env"], cfg["input_dim"]), jnp.float32)

    fwd = jax.jit(functools.partial(transformer_forward, cfg=cfg))
    out = jax.block_until_ready(fwd(obs, params))

    assert out.shape == (cfg["num_env"], cfg["d_model"])
    assert bool(jnp.all(jnp.isfinite(out)))

    ref = reference_forward(obs, params, cfg)
    max_err = float(jnp.max(jnp.abs(out - ref)))
    assert bool(jnp.allclose(out, ref, atol=2e-2, rtol=2e-2)), max_err

    print("KERNEL_OK")
</pallas_src>

<mosaic_0001>
module attributes {stable_mosaic.version = 11 : i64} {
  func.func @_transformer_kernel(%arg0: i32, %arg1: i32, %arg2: memref<1x8x16xf32, #tpu.memory_space<vmem>>, %arg3: memref<8x32xf32, #tpu.memory_space<vmem>>, %arg4: memref<16x32xf32, #tpu.memory_space<vmem>>, %arg5: memref<1x32xf32, #tpu.memory_space<vmem>>, %arg6: memref<1x32x96xf32, #tpu.memory_space<vmem>>, %arg7: memref<1x1x96xf32, #tpu.memory_space<vmem>>, %arg8: memref<1x32x32xf32, #tpu.memory_space<vmem>>, %arg9: memref<1x1x32xf32, #tpu.memory_space<vmem>>, %arg10: memref<1x32x64xf32, #tpu.memory_space<vmem>>, %arg11: memref<1x1x64xf32, #tpu.memory_space<vmem>>, %arg12: memref<1x64x32xf32, #tpu.memory_space<vmem>>, %arg13: memref<1x1x32xf32, #tpu.memory_space<vmem>>, %arg14: memref<1x1x32xf32, #tpu.memory_space<vmem>>, %arg15: memref<1x1x32xf32, #tpu.memory_space<vmem>>, %arg16: memref<1x1x32xf32, #tpu.memory_space<vmem>>, %arg17: memref<1x1x32xf32, #tpu.memory_space<vmem>>, %arg18: memref<1x1x32xf32, #tpu.memory_space<vmem>>, %arg19: memref<8x32xf32, #tpu.memory_space<vmem>>) attributes {dimension_semantics = [#tpu.dimension_semantics<parallel>, #tpu.dimension_semantics<arbitrary>], iteration_bounds = array<i64: 2, 2>, scalar_prefetch = 0 : i64, scratch_operands = 1 : i64, tpu.core_type = #tpu.core_type<tc>, window_params = [{transform_indices = @transform_0, window_bounds = array<i64: 1, 8, 16>}, {pipeline_mode = #tpu.pipeline_mode<synchronous>, transform_indices = @transform_1, window_bounds = array<i64: 8, 32>}, {pipeline_mode = #tpu.pipeline_mode<synchronous>, transform_indices = @transform_2, window_bounds = array<i64: 16, 32>}, {pipeline_mode = #tpu.pipeline_mode<synchronous>, transform_indices = @transform_3, window_bounds = array<i64: 1, 32>}, {transform_indices = @transform_4, window_bounds = array<i64: 1, 32, 96>}, {transform_indices = @transform_5, window_bounds = array<i64: 1, 1, 96>}, {transform_indices = @transform_6, window_bounds = array<i64: 1, 32, 32>}, {transform_indices = @transform_7, window_bounds = array<i64: 1, 1, 32>}, {transform_indices = @transform_8, window_bounds = array<i64: 1, 32, 64>}, {transform_indices = @transform_9, window_bounds = array<i64: 1, 1, 64>}, {transform_indices = @transform_10, window_bounds = array<i64: 1, 64, 32>}, {transform_indices = @transform_11, window_bounds = array<i64: 1, 1, 32>}, {transform_indices = @transform_12, window_bounds = array<i64: 1, 1, 32>}, {transform_indices = @transform_13, window_bounds = array<i64: 1, 1, 32>}, {transform_indices = @transform_14, window_bounds = array<i64: 1, 1, 32>}, {transform_indices = @transform_15, window_bounds = array<i64: 1, 1, 32>}, {transform_indices = @transform_16, window_bounds = array<i64: 1, 1, 32>}]} {
    %c0_i32 = arith.constant 0 : i32
    %0 = arith.cmpi eq, %arg1, %c0_i32 : i32
    %1 = arith.extui %0 : i1 to i32
    %c0_i32_0 = arith.constant 0 : i32
    %2 = arith.cmpi ne, %1, %c0_i32_0 : i32
    scf.if %2 {
      %c0_67 = arith.constant 0 : index
      %c0_68 = arith.constant 0 : index
      %c0_69 = arith.constant 0 : index
      %128 = vector.load %arg2[%c0_67, %c0_68, %c0_69] : memref<1x8x16xf32, #tpu.memory_space<vmem>>, vector<1x8x16xf32>
      %129 = vector.shape_cast %128 : vector<1x8x16xf32> to vector<8x16xf32>
      %c0_70 = arith.constant 0 : index
      %c0_71 = arith.constant 0 : index
      %130 = vector.load %arg4[%c0_70, %c0_71] : memref<16x32xf32, #tpu.memory_space<vmem>>, vector<16x32xf32>
      %cst_72 = arith.constant dense<0.000000e+00> : vector<8x32xf32>
      %131 = tpu.matmul %129, %130, %cst_72 {dimension_numbers = #tpu.dot_dimension_numbers<[1], [0], [0], [1], [0, 0, 1, 1], [], []>} : vector<8x16xf32>, vector<16x32xf32>, vector<8x32xf32> -> vector<8x32xf32>
      %c0_73 = arith.constant 0 : index
      %c0_74 = arith.constant 0 : index
      %132 = vector.load %arg5[%c0_73, %c0_74] : memref<1x32xf32, #tpu.memory_space<vmem>>, vector<1x32xf32>
      %133 = vector.broadcast %132 : vector<1x32xf32> to vector<8x32xf32>
      %134 = arith.addf %131, %133 : vector<8x32xf32>
      %cst_75 = arith.constant 5.65685415 : f32
      %135 = vector.broadcast %cst_75 : f32 to vector<8x32xf32>
      %136 = arith.mulf %134, %135 : vector<8x32xf32>
      %c0_76 = arith.constant 0 : index
      %c0_77 = arith.constant 0 : index
      %137 = vector.load %arg3[%c0_76, %c0_77] : memref<8x32xf32, #tpu.memory_space<vmem>>, vector<8x32xf32>
      %138 = arith.addf %136, %137 : vector<8x32xf32>
      %c0_78 = arith.constant 0 : index
      %c0_79 = arith.constant 0 : index
      %139 = vector.load %arg19[%c0_78, %c0_79] : memref<8x32xf32, #tpu.memory_space<vmem>>, vector<8x32xf32>
      tpu.vector_store %arg19[%c0_78, %c0_79], %138 {strides = array<i32>} : memref<8x32xf32, #tpu.memory_space<vmem>>, vector<8x32xf32>,
    } else {
    }
    %c0 = arith.constant 0 : index
    %c0_1 = arith.constant 0 : index
    %3 = vector.load %arg19[%c0, %c0_1] : memref<8x32xf32, #tpu.memory_space<vmem>>, vector<8x32xf32>
    %c0_2 = arith.constant 0 : index
    %c0_3 = arith.constant 0 : index
    %c0_4 = arith.constant 0 : index
    %4 = vector.load %arg6[%c0_2, %c0_3, %c0_4] : memref<1x32x96xf32, #tpu.memory_space<vmem>>, vector<1x32x96xf32>
    %5 = vector.shape_cast %4 : vector<1x32x96xf32> to vector<32x96xf32>
    %cst = arith.constant dense<0.000000e+00> : vector<8x96xf32>
    %6 = tpu.matmul %3, %5, %cst {dimension_numbers = #tpu.dot_dimension_numbers<[1], [0], [0], [1], [0, 0, 1, 1], [], []>} : vector<8x32xf32>, vector<32x96xf32>, vector<8x96xf32> -> vector<8x96xf32>
    %c0_5 = arith.constant 0 : index
    %c0_6 = arith.constant 0 : index
    %c0_7 = arith.constant 0 : index
    %7 = vector.load %arg7[%c0_5, %c0_6, %c0_7] : memref<1x1x96xf32, #tpu.memory_space<vmem>>, vector<1x1x96xf32>
    %8 = vector.shape_cast %7 : vector<1x1x96xf32> to vector<1x96xf32>
    %9 = vector.broadcast %8 : vector<1x96xf32> to vector<8x96xf32>
    %10 = arith.addf %6, %9 : vector<8x96xf32>
    %c0_8 = arith.constant 0 : index
    %c0_9 = arith.constant 0 : index
    %c0_10 = arith.constant 0 : index
    %11 = vector.load %arg8[%c0_8, %c0_9, %c0_10] : memref<1x32x32xf32, #tpu.memory_space<vmem>>, vector<1x32x32xf32>
    %12 = vector.shape_cast %11 : vector<1x32x32xf32> to vector<32x32xf32>
    %cst_11 = arith.constant 0.000000e+00 : f32
    %13 = vector.broadcast %cst_11 : f32 to vector<8x32xf32>
    %14 = vector.extract_strided_slice %10 {offsets = [0, 0], sizes = [8, 16], strides = [1, 1]} : vector<8x96xf32> to vector<8x16xf32>
    %15 = vector.extract_strided_slice %10 {offsets = [0, 32], sizes = [8, 16], strides = [1, 1]} : vector<8x96xf32> to vector<8x16xf32>
    %16 = vector.extract_strided_slice %10 {offsets = [0, 64], sizes = [8, 16], strides = [1, 1]} : vector<8x96xf32> to vector<8x16xf32>
    %cst_12 = arith.constant dense<0.000000e+00> : vector<8x8xf32>
    %17 = tpu.matmul %14, %15, %cst_12 {dimension_numbers = #tpu.dot_dimension_numbers<[1], [1], [0], [0], [0, 0, 1, 0], [], []>} : vector<8x16xf32>, vector<8x16xf32>, vector<8x8xf32> -> vector<8x8xf32>
    %cst_13 = arith.constant 2.500000e-01 : f32
    %18 = vector.broadcast %cst_13 : f32 to vector<8x8xf32>
    %19 = arith.mulf %17, %18 : vector<8x8xf32>
    %cst_14 = arith.constant dense<0xFF800000> : vector<8xf32>
    %20 = vector.multi_reduction <maximumf>, %19, %cst_14 [1] : vector<8x8xf32> to vector<8xf32>
    %21 = vector.shape_cast %20 : vector<8xf32> to vector<8x1xf32>
    %22 = vector.broadcast %21 : vector<8x1xf32> to vector<8x8xf32>
    %23 = arith.subf %19, %22 : vector<8x8xf32>
    %24 = math.exp %23 : vector<8x8xf32>
    %cst_15 = arith.constant dense<0.000000e+00> : vector<8xf32>
    %25 = vector.multi_reduction <add>, %24, %cst_15 [1] : vector<8x8xf32> to vector<8xf32>
    %26 = vector.shape_cast %25 : vector<8xf32> to vector<8x1xf32>
    %27 = tpu.reciprocal %26 {approx = true} : vector<8x1xf32> -> vector<8x1xf32>
    %28 = vector.broadcast %27 : vector<8x1xf32> to vector<8x8xf32>
    %29 = arith.mulf %24, %28 : vector<8x8xf32>
    %cst_16 = arith.constant dense<0.000000e+00> : vector<8x16xf32>
    %30 = tpu.matmul %29, %16, %cst_16 {dimension_numbers = #tpu.dot_dimension_numbers<[1], [0], [0], [1], [0, 0, 1, 1], [], []>} : vector<8x8xf32>, vector<8x16xf32>, vector<8x16xf32> -> vector<8x16xf32>
    %31 = vector.extract_strided_slice %12 {offsets = [0, 0], sizes = [16, 32], strides = [1, 1]} : vector<32x32xf32> to vector<16x32xf32>
    %cst_17 = arith.constant dense<0.000000e+00> : vector<8x32xf32>
    %32 = tpu.matmul %30, %31, %cst_17 {dimension_numbers = #tpu.dot_dimension_numbers<[1], [0], [0], [1], [0, 0, 1, 1], [], []>} : vector<8x16xf32>, vector<16x32xf32>, vector<8x32xf32> -> vector<8x32xf32>
    %33 = arith.addf %13, %32 : vector<8x32xf32>
    %34 = vector.extract_strided_slice %10 {offsets = [0, 16], sizes = [8, 16], strides = [1, 1]} : vector<8x96xf32> to vector<8x16xf32>
    %35 = vector.extract_strided_slice %10 {offsets = [0, 48], sizes = [8, 16], strides = [1, 1]} : vector<8x96xf32> to vector<8x16xf32>
    %36 = vector.extract_strided_slice %10 {offsets = [0, 80], sizes = [8, 16], strides = [1, 1]} : vector<8x96xf32> to vector<8x16xf32>
    %cst_18 = arith.constant dense<0.000000e+00> : vector<8x8xf32>
    %37 = tpu.matmul %34, %35, %cst_18 {dimension_numbers = #tpu.dot_dimension_numbers<[1], [1], [0], [0], [0, 0, 1, 0], [], []>} : vector<8x16xf32>, vector<8x16xf32>, vector<8x8xf32> -> vector<8x8xf32>
    %cst_19 = arith.constant 2.500000e-01 : f32
    %38 = vector.broadcast %cst_19 : f32 to vector<8x8xf32>
    %39 = arith.mulf %37, %38 : vector<8x8xf32>
    %cst_20 = arith.constant dense<0xFF800000> : vector<8xf32>
    %40 = vector.multi_reduction <maximumf>, %39, %cst_20 [1] : vector<8x8xf32> to vector<8xf32>
    %41 = vector.shape_cast %40 : vector<8xf32> to vector<8x1xf32>
    %42 = vector.broadcast %41 : vector<8x1xf32> to vector<8x8xf32>
    %43 = arith.subf %39, %42 : vector<8x8xf32>
    %44 = math.exp %43 : vector<8x8xf32>
    %cst_21 = arith.constant dense<0.000000e+00> : vector<8xf32>
    %45 = vector.multi_reduction <add>, %44, %cst_21 [1] : vector<8x8xf32> to vector<8xf32>
    %46 = vector.shape_cast %45 : vector<8xf32> to vector<8x1xf32>
    %47 = tpu.reciprocal %46 {approx = true} : vector<8x1xf32> -> vector<8x1xf32>
    %48 = vector.broadcast %47 : vector<8x1xf32> to vector<8x8xf32>
    %49 = arith.mulf %44, %48 : vector<8x8xf32>
    %cst_22 = arith.constant dense<0.000000e+00> : vector<8x16xf32>
    %50 = tpu.matmul %49, %36, %cst_22 {dimension_numbers = #tpu.dot_dimension_numbers<[1], [0], [0], [1], [0, 0, 1, 1], [], []>} : vector<8x8xf32>, vector<8x16xf32>, vector<8x16xf32> -> vector<8x16xf32>
    %51 = vector.extract_strided_slice %12 {offsets = [16, 0], sizes = [16, 32], strides = [1, 1]} : vector<32x32xf32> to vector<16x32xf32>
    %cst_23 = arith.constant dense<0.000000e+00> : vector<8x32xf32>
    %52 = tpu.matmul %50, %51, %cst_23 {dimension_numbers = #tpu.dot_dimension_numbers<[1], [0], [0], [1], [0, 0, 1, 1], [], []>} : vector<8x16xf32>, vector<16x32xf32>, vector<8x32xf32> -> vector<8x32xf32>
    %53 = arith.addf %33, %52 : vector<8x32xf32>
    %c0_24 = arith.constant 0 : index
    %c0_25 = arith.constant 0 : index
    %c0_26 = arith.constant 0 : index
    %54 = vector.load %arg9[%c0_24, %c0_25, %c0_26] : memref<1x1x32xf32, #tpu.memory_space<vmem>>, vector<1x1x32xf32>
    %55 = vector.shape_cast %54 : vector<1x1x32xf32> to vector<1x32xf32>
    %56 = vector.broadcast %55 : vector<1x32xf32> to vector<8x32xf32>
    %57 = arith.addf %53, %56 : vector<8x32xf32>
    %c0_27 = arith.constant 0 : index
    %c0_28 = arith.constant 0 : index
    %c0_29 = arith.constant 0 : index
    %58 = vector.load %arg14[%c0_27, %c0_28, %c0_29] : memref<1x1x32xf32, #tpu.memory_space<vmem>>, vector<1x1x32xf32>
    %59 = vector.shape_cast %58 : vector<1x1x32xf32> to vector<1x32xf32>
    %c0_30 = arith.constant 0 : index
    %c0_31 = arith.constant 0 : index
    %c0_32 = arith.constant 0 : index
    %60 = vector.load %arg15[%c0_30, %c0_31, %c0_32] : memref<1x1x32xf32, #tpu.memory_space<vmem>>, vector<1x1x32xf32>
    %61 = vector.shape_cast %60 : vector<1x1x32xf32> to vector<1x32xf32>
    %62 = arith.addf %3, %57 : vector<8x32xf32>
    %cst_33 = arith.constant dense<0.000000e+00> : vector<8xf32>
    %63 = vector.multi_reduction <add>, %62, %cst_33 [1] : vector<8x32xf32> to vector<8xf32>
    %64 = vector.shape_cast %63 : vector<8xf32> to vector<8x1xf32>
    %cst_34 = arith.constant 3.200000e+01 : f32
    %65 = vector.broadcast %cst_34 : f32 to vector<8x1xf32>
    %66 = arith.divf %64, %65 : vector<8x1xf32>
    %67 = vector.broadcast %66 : vector<8x1xf32> to vector<8x32xf32>
    %68 = arith.subf %62, %67 : vector<8x32xf32>
    %69 = arith.mulf %68, %68 : vector<8x32xf32>
    %cst_35 = arith.constant dense<0.000000e+00> : vector<8xf32>
    %70 = vector.multi_reduction <add>, %69, %cst_35 [1] : vector<8x32xf32> to vector<8xf32>
    %71 = vector.shape_cast %70 : vector<8xf32> to vector<8x1xf32>
    %cst_36 = arith.constant 3.200000e+01 : f32
    %72 = vector.broadcast %cst_36 : f32 to vector<8x1xf32>
    %73 = arith.divf %71, %72 : vector<8x1xf32>
    %cst_37 = arith.constant 9.99999974E-6 : f32
    %74 = vector.broadcast %cst_37 : f32 to vector<8x1xf32>
    %75 = arith.addf %73, %74 : vector<8x1xf32>
    %76 = math.rsqrt %75 : vector<8x1xf32>
    %77 = vector.broadcast %76 : vector<8x1xf32> to vector<8x32xf32>
    %78 = arith.mulf %68, %77 : vector<8x32xf32>
    %79 = vector.broadcast %59 : vector<1x32xf32> to vector<8x32xf32>
    %80 = arith.mulf %78, %79 : vector<8x32xf32>
    %81 = vector.broadcast %61 : vector<1x32xf32> to vector<8x32xf32>
    %82 = arith.addf %80, %81 : vector<8x32xf32>
    %c0_38 = arith.constant 0 : index
    %c0_39 = arith.constant 0 : index
    %c0_40 = arith.constant 0 : index
    %83 = vector.load %arg10[%c0_38, %c0_39, %c0_40] : memref<1x32x64xf32, #tpu.memory_space<vmem>>, vector<1x32x64xf32>
    %84 = vector.shape_cast %83 : vector<1x32x64xf32> to vector<32x64xf32>
    %cst_41 = arith.constant dense<0.000000e+00> : vector<8x64xf32>
    %85 = tpu.matmul %82, %84, %cst_41 {dimension_numbers = #tpu.dot_dimension_numbers<[1], [0], [0], [1], [0, 0, 1, 1], [], []>} : vector<8x32xf32>, vector<32x64xf32>, vector<8x64xf32> -> vector<8x64xf32>
    %c0_42 = arith.constant 0 : index
    %c0_43 = arith.constant 0 : index
    %c0_44 = arith.constant 0 : index
    %86 = vector.load %arg11[%c0_42, %c0_43, %c0_44] : memref<1x1x64xf32, #tpu.memory_space<vmem>>, vector<1x1x64xf32>
    %87 = vector.shape_cast %86 : vector<1x1x64xf32> to vector<1x64xf32>
    %88 = vector.broadcast %87 : vector<1x64xf32> to vector<8x64xf32>
    %89 = arith.addf %85, %88 : vector<8x64xf32>
    %cst_45 = arith.constant 0.000000e+00 : f32
    %90 = vector.broadcast %cst_45 : f32 to vector<8x64xf32>
    %91 = arith.maximumf %89, %90 : vector<8x64xf32>
    %c0_46 = arith.constant 0 : index
    %c0_47 = arith.constant 0 : index
    %c0_48 = arith.constant 0 : index
    %92 = vector.load %arg12[%c0_46, %c0_47, %c0_48] : memref<1x64x32xf32, #tpu.memory_space<vmem>>, vector<1x64x32xf32>
    %93 = vector.shape_cast %92 : vector<1x64x32xf32> to vector<64x32xf32>
    %cst_49 = arith.constant dense<0.000000e+00> : vector<8x32xf32>
    %94 = tpu.matmul %91, %93, %cst_49 {dimension_numbers = #tpu.dot_dimension_numbers<[1], [0], [0], [1], [0, 0, 1, 1], [], []>} : vector<8x64xf32>, vector<64x32xf32>, vector<8x32xf32> -> vector<8x32xf32>
    %c0_50 = arith.constant 0 : index
    %c0_51 = arith.constant 0 : index
    %c0_52 = arith.constant 0 : index
    %95 = vector.load %arg13[%c0_50, %c0_51, %c0_52] : memref<1x1x32xf32, #tpu.memory_space<vmem>>, vector<1x1x32xf32>
    %96 = vector.shape_cast %95 : vector<1x1x32xf32> to vector<1x32xf32>
    %97 = vector.broadcast %96 : vector<1x32xf32> to vector<8x32xf32>
    %98 = arith.addf %94, %97 : vector<8x32xf32>
    %c0_53 = arith.constant 0 : index
    %c0_54 = arith.constant 0 : index
    %c0_55 = arith.constant 0 : index
    %99 = vector.load %arg16[%c0_53, %c0_54, %c0_55] : memref<1x1x32xf32, #tpu.memory_space<vmem>>, vector<1x1x32xf32>
    %100 = vector.shape_cast %99 : vector<1x1x32xf32> to vector<1x32xf32>
    %c0_56 = arith.constant 0 : index
    %c0_57 = arith.constant 0 : index
    %c0_58 = arith.constant 0 : index
    %101 = vector.load %arg17[%c0_56, %c0_57, %c0_58] : memref<1x1x32xf32, #tpu.memory_space<vmem>>, vector<1x1x32xf32>
    %102 = vector.shape_cast %101 : vector<1x1x32xf32> to vector<1x32xf32>
    %103 = arith.addf %82, %98 : vector<8x32xf32>
    %cst_59 = arith.constant dense<0.000000e+00> : vector<8xf32>
    %104 = vector.multi_reduction <add>, %103, %cst_59 [1] : vector<8x32xf32> to vector<8xf32>
    %105 = vector.shape_cast %104 : vector<8xf32> to vector<8x1xf32>
    %cst_60 = arith.constant 3.200000e+01 : f32
    %106 = vector.broadcast %cst_60 : f32 to vector<8x1xf32>
    %107 = arith.divf %105, %106 : vector<8x1xf32>
    %108 = vector.broadcast %107 : vector<8x1xf32> to vector<8x32xf32>
    %109 = arith.subf %103, %108 : vector<8x32xf32>
    %110 = arith.mulf %109, %109 : vector<8x32xf32>
    %cst_61 = arith.constant dense<0.000000e+00> : vector<8xf32>
    %111 = vector.multi_reduction <add>, %110, %cst_61 [1] : vector<8x32xf32> to vector<8xf32>
    %112 = vector.shape_cast %111 : vector<8xf32> to vector<8x1xf32>
    %cst_62 = arith.constant 3.200000e+01 : f32
    %113 = vector.broadcast %cst_62 : f32 to vector<8x1xf32>
    %114 = arith.divf %112, %113 : vector<8x1xf32>
    %cst_63 = arith.constant 9.99999974E-6 : f32
    %115 = vector.broadcast %cst_63 : f32 to vector<8x1xf32>
    %116 = arith.addf %114, %115 : vector<8x1xf32>
    %117 = math.rsqrt %116 : vector<8x1xf32>
    %118 = vector.broadcast %117 : vector<8x1xf32> to vector<8x32xf32>
    %119 = arith.mulf %109, %118 : vector<8x32xf32>
    %120 = vector.broadcast %100 : vector<1x32xf32> to vector<8x32xf32>
    %121 = arith.mulf %119, %120 : vector<8x32xf32>
    %122 = vector.broadcast %102 : vector<1x32xf32> to vector<8x32xf32>
    %123 = arith.addf %121, %122 : vector<8x32xf32>
    %c0_64 = arith.constant 0 : index
    %c0_65 = arith.constant 0 : index
    %124 = vector.load %arg19[%c0_64, %c0_65] : memref<8x32xf32, #tpu.memory_space<vmem>>, vector<8x32xf32>
    tpu.vector_store %arg19[%c0_64, %c0_65], %123 {strides = array<i32>} : memref<8x32xf32, #tpu.memory_space<vmem>>, vector<8x32xf32>,
    %c1_i32 = arith.constant 1 : i32
    %125 = arith.cmpi eq, %arg1, %c1_i32 : i32
    %126 = arith.extui %125 : i1 to i32
    %c0_i32_66 = arith.constant 0 : i32
    %127 = arith.cmpi ne, %126, %c0_i32_66 : i32
    scf.if %127 {
      %128 = vector.extract_strided_slice %123 {offsets = [7, 0], sizes = [1, 32], strides = [1, 1]} : vector<8x32xf32> to vector<1x32xf32>
      %c0_67 = arith.constant 0 : index
      %c0_68 = arith.constant 0 : index
      %c0_69 = arith.constant 0 : index
      %129 = vector.load %arg18[%c0_67, %c0_68, %c0_69] : memref<1x1x32xf32, #tpu.memory_space<vmem>>, vector<1x1x32xf32>
      %130 = vector.shape_cast %129 : vector<1x1x32xf32> to vector<1x32xf32>
      %131 = vector.shape_cast %128 : vector<1x32xf32> to vector<1x1x32xf32>
      tpu.vector_store %arg18[%c0_67, %c0_68, %c0_69], %131 {strides = array<i32>} : memref<1x1x32xf32, #tpu.memory_space<vmem>>, vector<1x1x32xf32>,
    } else {
    }
    return
  }
  func.func @transform_0(%arg0: i32, %arg1: i32) -> (i32, i32, i32) {
    %c0_i32 = arith.constant 0 : i32
    %c0_i32_0 = arith.constant 0 : i32
    %c0_i32_1 = arith.constant 0 : i32
    return %arg0, %c0_i32, %c0_i32_0 : i32, i32, i32
  }
  func.func @transform_1(%arg0: i32, %arg1: i32) -> (i32, i32) {
    %c0_i32 = arith.constant 0 : i32
    %c0_i32_0 = arith.constant 0 : i32
    %c0_i32_1 = arith.constant 0 : i32
    return %c0_i32, %c0_i32_0 : i32, i32
  }
  func.func @transform_2(%arg0: i32, %arg1: i32) -> (i32, i32) {
    %c0_i32 = arith.constant 0 : i32
    %c0_i32_0 = arith.constant 0 : i32
    %c0_i32_1 = arith.constant 0 : i32
    return %c0_i32, %c0_i32_0 : i32, i32
  }
  func.func @transform_3(%arg0: i32, %arg1: i32) -> (i32, i32) {
    %c0_i32 = arith.constant 0 : i32
    %c0_i32_0 = arith.constant 0 : i32
    %c0_i32_1 = arith.constant 0 : i32
    return %c0_i32, %c0_i32_0 : i32, i32
  }
  func.func @transform_4(%arg0: i32, %arg1: i32) -> (i32, i32, i32) {
    %c0_i32 = arith.constant 0 : i32
    %c0_i32_0 = arith.constant 0 : i32
    %c0_i32_1 = arith.constant 0 : i32
    return %arg1, %c0_i32, %c0_i32_0 : i32, i32, i32
  }
  func.func @transform_5(%arg0: i32, %arg1: i32) -> (i32, i32, i32) {
    %c0_i32 = arith.constant 0 : i32
    %c0_i32_0 = arith.constant 0 : i32
    %c0_i32_1 = arith.constant 0 : i32
    return %arg1, %c0_i32, %c0_i32_0 : i32, i32, i32
  }
  func.func @transform_6(%arg0: i32, %arg1: i32) -> (i32, i32, i32) {
    %c0_i32 = arith.constant 0 : i32
    %c0_i32_0 = arith.constant 0 : i32
    %c0_i32_1 = arith.constant 0 : i32
    return %arg1, %c0_i32, %c0_i32_0 : i32, i32, i32
  }
  func.func @transform_7(%arg0: i32, %arg1: i32) -> (i32, i32, i32) {
    %c0_i32 = arith.constant 0 : i32
    %c0_i32_0 = arith.constant 0 : i32
    %c0_i32_1 = arith.constant 0 : i32
    return %arg1, %c0_i32, %c0_i32_0 : i32, i32, i32
  }
  func.func @transform_8(%arg0: i32, %arg1: i32) -> (i32, i32, i32) {
    %c0_i32 = arith.constant 0 : i32
    %c0_i32_0 = arith.constant 0 : i32
    %c0_i32_1 = arith.constant 0 : i32
    return %arg1, %c0_i32, %c0_i32_0 : i32, i32, i32
  }
  func.func @transform_9(%arg0: i32, %arg1: i32) -> (i32, i32, i32) {
    %c0_i32 = arith.constant 0 : i32
    %c0_i32_0 = arith.constant 0 : i32
    %c0_i32_1 = arith.constant 0 : i32
    return %arg1, %c0_i32, %c0_i32_0 : i32, i32, i32
  }
  func.func @transform_10(%arg0: i32, %arg1: i32) -> (i32, i32, i32) {
    %c0_i32 = arith.constant 0 : i32
    %c0_i32_0 = arith.constant 0 : i32
    %c0_i32_1 = arith.constant 0 : i32
    return %arg1, %c0_i32, %c0_i32_0 : i32, i32, i32
  }
  func.func @transform_11(%arg0: i32, %arg1: i32) -> (i32, i32, i32) {
    %c0_i32 = arith.constant 0 : i32
    %c0_i32_0 = arith.constant 0 : i32
    %c0_i32_1 = arith.constant 0 : i32
    return %arg1, %c0_i32, %c0_i32_0 : i32, i32, i32
  }
  func.func @transform_12(%arg0: i32, %arg1: i32) -> (i32, i32, i32) {
    %c0_i32 = arith.constant 0 : i32
    %c0_i32_0 = arith.constant 0 : i32
    %c0_i32_1 = arith.constant 0 : i32
    return %arg1, %c0_i32, %c0_i32_0 : i32, i32, i32
  }
  func.func @transform_13(%arg0: i32, %arg1: i32) -> (i32, i32, i32) {
    %c0_i32 = arith.constant 0 : i32
    %c0_i32_0 = arith.constant 0 : i32
    %c0_i32_1 = arith.constant 0 : i32
    return %arg1, %c0_i32, %c0_i32_0 : i32, i32, i32
  }
  func.func @transform_14(%arg0: i32, %arg1: i32) -> (i32, i32, i32) {
    %c0_i32 = arith.constant 0 : i32
    %c0_i32_0 = arith.constant 0 : i32
    %c0_i32_1 = arith.constant 0 : i32
    return %arg1, %c0_i32, %c0_i32_0 : i32, i32, i32
  }
  func.func @transform_15(%arg0: i32, %arg1: i32) -> (i32, i32, i32) {
    %c0_i32 = arith.constant 0 : i32
    %c0_i32_0 = arith.constant 0 : i32
    %c0_i32_1 = arith.constant 0 : i32
    return %arg1, %c0_i32, %c0_i32_0 : i32, i32, i32
  }
  func.func @transform_16(%arg0: i32, %arg1: i32) -> (i32, i32, i32) {
    %c0_i32 = arith.constant 0 : i32
    %c0_i32_0 = arith.constant 0 : i32
    %c0_i32_1 = arith.constant 0 : i32
    return %arg0, %c0_i32, %c0_i32_0 : i32, i32, i32
  }
}

</mosaic_0001>

<bundles_post_ra>
// kernel: transformer_forward.1
= control target key start
LH: loop header
LB: loop body
LE: loop exit
PB: predicated region body
PF: predicated region fallthrough
CT: control target
= control target key end

     0   :  { %s2598_s0 = inlined_call_operand.vmem [shape: f32[2,8,16], index: 0, kind: input, shape index: {}]   ;;  %s2599_s1 = inlined_call_operand.vmem [shape: f32[8,32], index: 1, kind: input, shape index: {}]   ;;  %s2600_s2 = inlined_call_operand.vmem [shape: f32[16,32], index: 2, kind: input, shape index: {}]   ;;  %s2601_s3 = inlined_call_operand.vmem [shape: f32[1,32], index: 3, kind: input, shape index: {}]   ;;  %s2602_s4 = inlined_call_operand.vmem [shape: f32[2,32,96], index: 4, kind: input, shape index: {}]   ;;  %s2603_s5 = inlined_call_operand.vmem [shape: f32[2,1,96], index: 5, kind: input, shape index: {}]   ;;  %s2604_s6 = inlined_call_operand.vmem [shape: f32[2,32,32], index: 6, kind: input, shape index: {}]   ;;  %s2605_s7 = inlined_call_operand.vmem [shape: f32[2,1,32], index: 7, kind: input, shape index: {}]   ;;  %s2606_s8 = inlined_call_operand.vmem [shape: f32[2,32,64], index: 8, kind: input, shape index: {}]   ;;  %s2607_s9 = inlined_call_operand.vmem [shape: f32[2,1,64], index: 9, kind: input, shape index: {}]   ;;  %s2608_s10 = inlined_call_operand.vmem [shape: f32[2,64,32], index: 10, kind: input, shape index: {}]   ;;  %s2609_s11 = inlined_call_operand.vmem [shape: f32[2,1,32], index: 11, kind: input, shape index: {}]   ;;  %s2610_s12 = inlined_call_operand.vmem [shape: f32[2,1,32], index: 12, kind: input, shape index: {}]   ;;  %s2611_s13 = inlined_call_operand.vmem [shape: f32[2,1,32], index: 13, kind: input, shape index: {}]   ;;  %s2612_s14 = inlined_call_operand.vmem [shape: f32[2,1,32], index: 14, kind: input, shape index: {}]   ;;  %s2613_s15 = inlined_call_operand.vmem [shape: f32[2,1,32], index: 15, kind: input, shape index: {}]   ;;  %s2614_s16 = inlined_call_operand.hbm [shape: f32[2,1,32], index: 16, kind: output, shape index: {}]  }
   0x1   :  { %2630 = sst [smem:[#allocation19_spill]] %s2598_s0 }
   0x2   :  { %2631 = sst [smem:[#allocation20_spill]] %s2599_s1 }
   0x3   :  { %2632 = sst [smem:[#allocation21_spill]] %s2600_s2 }
   0x4   :  { %2633 = sst [smem:[#allocation22_spill]] %s2601_s3 }
   0x5   :  { %2634 = sst [smem:[#allocation23_spill]] %s2602_s4 }
   0x6   :  { %2635 = sst [smem:[#allocation24_spill]] %s2604_s6 }
   0x7   :  { %2636 = sst [smem:[#allocation25_spill]] %s2606_s8 }
   0x8   :  { %2637 = sst [smem:[#allocation26_spill]] %s2614_s16 }
   0x9   :  { %21 = vsyncpa [#allocation4], 0 }
   0xa   :  { %23 = vsyncpa [#allocation4 + $0x1], 0  ;;  %s2274_s21 = smov 0   ;;  %s2276_s22 = smov 0  }
   0xb   :  { %s2278_s23 = smov 0   ;;  %s2280_s24 = smov 0  }
   0xc   :  { %s2282_s25 = smov 0   ;;  %s2284_s26 = smov 0  }
   0xd   :  { %s2286_s27 = smov 0   ;;  %s2288_s28 = smov 0  }
   0xe   :  { %2638 = sst [smem:[#allocation6_spill]] %s2286_s27 }
   0xf LB: > { %s2640_s27 = sld [smem:[#allocation6_spill]]  ;;  %s1831_s29 = sadd.s32 4294967295, %s2177_s28   ;;  %s2177_s28 = sphi %s2288_s28, %s29_s28   ;;  %s2169_s26 = sphi %s2284_s26, %s2685_s26   ;;  %s2165_s25 = sphi %s2282_s25, %s2684_s25   ;;  %s2161_s24 = sphi %s2280_s24, %s2683_s24   ;;  %s2157_s23 = sphi %s2278_s23, %s2682_s23   ;;  %s2153_s22 = sphi %s2276_s22, %s2688_s22   ;;  %s2149_s21 = sphi %s2274_s21, %s2687_s21  }
  0x10   : > { %2641 = sst [smem:[#allocation6_spill]] %s2149_s21  ;;  %s1832_s30 = sadd.s32 4294967294, %s2177_s28  }
  0x11   : > { %2642 = sst [smem:[#allocation7_spill]] %s2157_s23  ;;  %s38_s0 = sadd.s32 1, %s2169_s26 }
  0x12   : > { %2643 = sst [smem:[#allocation8_spill]] %s2161_s24  ;;  %p39_p0 = scmp.ge.s32.totalorder %s38_s0, 2 }
  0x13   : > { %2644 = sst [smem:[#allocation9_spill]] %s2165_s25  ;;  %p459_p1 = scmp.ne.s32.totalorder %s2157_s23, %s2153_s22 }
  0x14   : > { %2645 = sst [smem:[#allocation10_spill]] %s2169_s26  ;;  %p460_p2 = scmp.eq.s32.totalorder %s1831_s29, 3 }
  0x15   : > { %2646 = sst [smem:[#allocation11_spill]] %s2640_s27  ;;  %s41_s17 = sadd.s32 1, %s2640_s27 }
  0x16   : > { %2647 = sst [smem:[#allocation12_spill]] %s2177_s28  ;;  %s2691_s0 = smov (%p39_p0, %s38_s0), 0 }
  0x17   : > { %2648 = sst [smem:[#allocation13_spill]] %s2691_s0  ;;  %s2693_s17 = smov (!%p39_p0, %s41_s17), %s2640_s27 }
  0x18   : > { %p2323_p3 = por %p460_p2, %p459_p1  ;;  %p465_p4 = scmp.ne.s32.totalorder %s2153_s22, %s2149_s21 }
  0x19   : > { %p43_p5 = scmp.ge.s32.totalorder %s2693_s17, 2  ;;  %p466_p6 = scmp.eq.s32.totalorder %s1832_s30, 3 }
  0x1a   : > { %s2649_s18 = scalar_select %p2323_p3, 1, 0 }
  0x1b   : > { %p1835_p7 = scmp.ge.s32.totalorder %s2177_s28, 1  ;;  %p580_p8 = scmp.lt.s32.totalorder %s2177_s28, 5 }
  0x1c   : > { %2650 = sst [smem:[#allocation14_spill]] %s2649_s18  ;;  %s2695_s17 = smov (%p43_p5, %s2693_s17), 0 }
  0x1d   : > { %2651 = sst [smem:[#allocation15_spill]] %s2695_s17  ;;  %p2333_p9 = por %p466_p6, %p465_p4 }
  0x1e   : > { %p581_p10 = pnand %p1835_p7, %p580_p8  ;;  %s446_s20 = ssub.s32 %s2640_s27, %s2695_s17 }
  0x1f   : > { %s2652_s19 = scalar_select %p2333_p9, 1, 0 }
  0x20   : > { %s449_s29 = sadd.s32 1, %s2157_s23  ;;  %p447_p11 = scmp.eq.s32.totalorder %s446_s20, 0 }
  0x21   : > { %2653 = sst [smem:[#allocation16_spill]] %s2652_s19  ;;  %584 = sbr.rel (%p581_p10) target bundleno = 2533 (0x9e5), region = 84 }
  0x22   : > { %s2341_s0 = scalar_select %p447_p11, %s2157_s23, %s449_s29  }
  0x24   : > { %2654 = sst [smem:[#allocation17_spill]] %s2341_s0 }
  0x26   : > { %p672_p12 = scmp.lt.s32.totalorder %s2165_s25, 1  ;;  %p676_p13 = scmp.lt.s32.totalorder %s2161_s24, 1 }
  0x27   : > { %s2655_s27 = sld [smem:[#allocation19_spill]]  ;;  %s2660_s1 = sand.u32 1, %s2153_s22  }
  0x28   : > { %s673_s26 = scalar_select %p672_p12, %s2165_s25, 1 }
  0x29   : > { %s2348_s21 = scalar_select %p676_p13, %s2161_s24, 1 }
  0x2a   : > { %s1836_s20 = sshll.u32 %s673_s26, 3  ;;  %s2656_s4 = sld [smem:[#allocation23_spill]] }
  0x2b   : > { %s1871_s0 = sshll.u32 %s2348_s21, 5  ;;  %s2657_s6 = sld [smem:[#allocation24_spill]] }
  0x2c   : > { %s2659_s8 = sld [smem:[#allocation25_spill]]  ;;  %s1874_s16 = sshll.u32 %s2348_s21, 6 }
  0x2d   : > { %s675_s30 = scalar_lea.vmem %s2655_s27, %s1836_s20  ;;  %s713_s17 = scalar_lea.vmem %s2611_s13, %s2348_s21 }
  0x2e   : > { %s719_s18 = scalar_lea.vmem %s2613_s15, %s2348_s21 }
  0x30   : > { %s2357_s28 = scalar_lea.vmem %s2656_s4, %s1871_s0  ;;  %s716_s4 = scalar_lea.vmem %s2612_s14, %s2348_s21 }
  0x31   : > { %s2366_s2 = scalar_lea.vmem %s2657_s6, %s1871_s0  ;;  %s2409_s6 = scalar_lea.vmem [#allocation3], %s2660_s1 }
  0x32   : > { %2658 = sst [smem:[#allocation18_spill]] %s2366_s2  ;;  %s2375_s29 = scalar_lea.vmem %s2659_s8, %s1871_s0 }
  0x33   : > { %s2389_s2 = scalar_lea.vmem %s2608_s10, %s1874_s16  ;;  %s2661_s16 = sld [smem:[#allocation8_spill]] }
  0x39   : > { %p1845_p0 = scmp.ne.s32.totalorder %s2661_s16, 0 }
  0x3a   : > { %s2662_s26 = sld [smem:[#allocation21_spill]] (!%p1845_p0) }
  0x3b   : > { %723 = sbr.rel (%p1845_p0) target bundleno = 269 (0x10d), region = 88  ;;  %s2664_s23 = sld [smem:[#allocation22_spill]] (!%p1845_p0) }
  0x3c   : > { %s2665_s16 = sld [smem:[#allocation20_spill]] (!%p1845_p0) }
  0x40   : > { %s2663_s27 = smov %s2662_s26  ;;  %v726_v0 = vld [vmem:[%s2662_s26 + $0x8] sm:$0xff]  ;;  %v2179_v1 = vmov 0.0   ;;  %vm2180_vm0 = vmmov 0   ;;  %v724_v3 = vld [vmem:[%s675_s30] sm:$0xff]  ;;  %vm734_vm1 = vcmask 130048   ;;  %vm811_vm2 = vcmask 261120  }
  0x41   : > { %1911 = vmatprep.subr.mxu0 %v2179_v1  ;;  %v725_v2 = vld [vmem:[%s2663_s27] sm:$0xff]  ;;  %1915 = vmatprep.mubr.msk.f32.mxu0 %vm2180_vm0, %v2179_v1 }
  0x42   : > { %1912 = vmatpush3.msra.mxu0 %v726_v0  ;;  %v1846_v4 = vld [vmem:[%s2664_s23] ss:$0 sm:$0xff] }
  0x43   : > { %1913 = vmatprep.subr.mxu0 %v2179_v1  ;;  %v809_v7 = vld [vmem:[%s2665_s16] sm:$0xff] }
  0x44   : > { %1914 = vmatpush3.msra.mxu0 %v725_v2 }
  0x45   : > { %1916 = vmatmul.mubr.msk.f32.vlgmr.msra.gmra.mxu0 %vm734_vm1, %v724_v3 }
 0x105   : > { %v804_v5 = vpop.f32.mrf.mxu0 }
 0x106   : > { %v805_v6 = vadd.f32 %v1846_v4, %v804_v5 }
 0x107   : > { %v1917_v8 = vpop.f32.mrf.mxu0 }
 0x108   : > { %v808_v9 = vmul.f32 5.656854, %v805_v6 }
 0x10a   : > { %v810_v10 = vadd.f32 %v809_v7, %v808_v9 }
 0x10c   : > { %812 = vst.msk [vmem:[#allocation2] sm:$0xff] %vm811_vm2, %v810_v10 }
 0x10d PF: > { %v817_v11 = vld [vmem:[%s2357_s28 + $0x18] sm:$0xff]  ;;  %v2181_v12 = vmov 0.0   ;;  %v816_v13 = vld [vmem:[%s2357_s28 + $0x10] sm:$0xff]  ;;  %vm2182_vm3 = vmmov 0   ;;  %v815_v14 = vld [vmem:[%s2357_s28 + $0x8] sm:$0xff]  ;;  %vm825_vm4 = vcmask 261120   ;;  %s2666_s24 = scalar_lea.vmem %s2603_s5, %s2348_s21  ;;  %s2668_s25 = scalar_lea.vmem %s2605_s7, %s2348_s21 }
 0x10e   : > { %1918 = vmatprep.subr.mxu0 %v2181_v12  ;;  %1926 = vmatprep.mubr.msk.f32.mxu0 %vm2182_vm3, %v2181_v12  ;;  %v814_v15 = vld [vmem:[%s2357_s28] sm:$0xff]  ;;  %s2183_s28 = smov 112   ;;  %s2184_s26 = smov 96   ;;  %vm906_vm5 = vcmask 130048   ;;  %vm982_vm6 = vcmask 64512   ;;  %v1424_v8 = vld [vmem:[%s2375_s29 + $0x18] sm:$0xff] }
 0x10f   : > { %1919 = vmatpush3.msra.mxu0 %v817_v11  ;;  %1934 = vmatprep.subr.mxu1 %v2181_v12  ;;  %v1848_v17 = vld [vmem:[%s2666_s24] ss:$0 sm:$0xff]  ;;  %s2185_s0 = smov 80   ;;  %s2186_s20 = smov 48   ;;  %v1423_v9 = vld [vmem:[%s2375_s29 + $0x10] sm:$0xff]  ;;  %v1422_v10 = vld [vmem:[%s2375_s29 + $0x8] sm:$0xff] }
 0x110   : > { %1920 = vmatprep.subr.mxu0 %v2181_v12  ;;  %1936 = vmatprep.mubr.msk.f32.mxu1 %vm2182_vm3, %v2181_v12  ;;  %s2187_s8 = smov 64   ;;  %s2667_s1 = sld [smem:[#allocation18_spill]]  ;;  %v1858_v61 = vld [vmem:[%s2668_s25] ss:$0 sm:$0xff]  ;;  %vm1521_vm7 = vcmask 523264  }
 0x111   : > { %1921 = vmatpush3.msra.mxu0 %v816_v13  ;;  %v1421_v11 = vld [vmem:[%s2375_s29] sm:$0xff]  ;;  %v1513_v13 = vld [vmem:[%s2389_s2 + $0x38] sm:$0xff]  ;;  %s2669_s30 = scalar_lea.vmem %s2610_s12, %s2348_s21  ;;  %s2672_s25 = sld [smem:[#allocation8_spill]] }
 0x112   : > { %1922 = vmatprep.subr.mxu0 %v2181_v12 }
 0x113   : > { %1923 = vmatpush3.msra.mxu0 %v815_v14  ;;  %v2436_v16 = vld [vmem:[#allocation2] sm:$0xff]  ;;  %v1512_v14 = vld [vmem:[%s2389_s2 + $0x30] sm:$0xff] }
 0x114   : > { %1924 = vmatprep.subr.mxu0 %v2181_v12 }
 0x115   : > { %1925 = vmatpush3.msra.mxu0 %v814_v15  ;;  %v1511_v15 = vld [vmem:[%s2389_s2 + $0x28] sm:$0xff] }
 0x116   : > { %1927 = vmatmul.mubr.msk.f32.vlgmr.msra.gmra.mxu0 %vm825_vm4, %v2436_v16  ;;  %1929 = vmatprep.subr.mxu0 %v2181_v12  ;;  %v900_v50 = vld [vmem:[%s2667_s1 + $0x8] sm:$0xff]  ;;  %v899_v51 = vld [vmem:[%s2667_s1] sm:$0xff]  ;;  %v902_v52 = vld [vmem:[%s2667_s1 + $0x18] sm:$0xff] }
 0x117   : > { %1931 = vmatprep.mubr.msk.f32.mxu0 %vm2182_vm3, %v2181_v12  ;;  %v901_v53 = vld [vmem:[%s2667_s1 + $0x10] sm:$0xff]  ;;  %p1867_p1 = scmp.ne.s32.totalorder %s2672_s25, 1 }
 0x1d6   : > { %v895_v18 = vpop.f32.mrf.mxu0 }
 0x1d7   : > { %v896_v19 = vadd.f32 %v1848_v17, %v895_v18  ;;  %v1509_v17 = vld [vmem:[%s2389_s2 + $0x18] sm:$0xff] }
 0x1d8   : > { %v1928_v20 = vpop.f32.mrf.mxu0 }
 0x1d9   : > { %1070 = vrot.lane.b32.xlu1 %v896_v19, %s2183_s28  ;;  %904 = vrot.lane.b32.xlu0 %v896_v19, %s2184_s26 }
 0x1dd   : > { %1072 = vrot.lane.b32.xlu0 %v896_v19, %s2185_s0  ;;  %s2670_s0 = scalar_lea.vmem %s2607_s9, %s2348_s21 }
 0x24b   : > { %v905_v21 = vpop.permute.xlu0 %904  ;;  %v1071_v23 = vpop.permute.xlu1 %1070 }
 0x24c   : > { %1930 = vmatpush3.xpose.msk.msra.mxu0 %vm906_vm5, %v905_v21 }
 0x24d   : > { %1939 = vmatprep.subr.mxu0 %v2181_v12 }
 0x24f   : > { %1932 = vmatmul.mubr.msk.f32.vlgmr.msra.gmra.mxu0 %vm906_vm5, %v896_v19  ;;  %v1073_v22 = vpop.permute.xlu0 %1072 }
 0x250   : > { %1940 = vmatpush3.xpose.msk.msra.mxu0 %vm906_vm5, %v1073_v22  ;;  %1941 = vmatprep.mubr.msk.f32.mxu0 %vm2182_vm3, %v2181_v12  ;;  %v1859_v22 = vld [vmem:[%s2669_s30] ss:$0 sm:$0xff] }
 0x251   : > { %1949 = vmatprep.subr.mxu0 %v2181_v12 }
 0x253   : > { %1942 = vmatmul.mubr.msk.f32.vlgmr.msra.gmra.mxu0 %vm906_vm5, %v1071_v23 }
 0x254   : > { %1953 = vmatprep.mubr.msk.f32.mxu0 %vm2182_vm3, %v2181_v12  ;;  %1950 = vmatpush3.msra.mxu0 %v902_v52 }
 0x255   : > { %1951 = vmatprep.subr.mxu0 %v2181_v12 }
 0x256   : > { %1952 = vmatpush3.msra.mxu0 %v901_v53 }
 0x257   : > { %1963 = vmatprep.subr.mxu0 %v2181_v12 }
 0x30f   : > { %v977_v24 = vpop.f32.mrf.mxu0 }
 0x310   : > { %v981_v25 = vmul.f32 0.25, %v977_v24  ;;  %v1860_v24 = vld [vmem:[%s713_s17] ss:$0 sm:$0xff] }
 0x311   : > { %v1933_v26 = vpop.f32.mrf.mxu0 }
 0x312   : > { %v983_v27 = vsel %vm982_vm6, %v981_v25, -inf }
 0x313   : > { %984 = vmax.xlane.f32.xlu1 %v983_v27  ;;  %v1144_v28 = vpop.f32.mrf.mxu0  ;;  %v1508_v27 = vld [vmem:[%s2389_s2 + $0x10] sm:$0xff] }
 0x314   : > { %v1148_v29 = vmul.f32 0.25, %v1144_v28  ;;  %v1507_v28 = vld [vmem:[%s2389_s2 + $0x8] sm:$0xff] }
 0x315   : > { %v1943_v30 = vpop.f32.mrf.mxu0 }
 0x316   : > { %v1149_v31 = vsel %vm982_vm6, %v1148_v29, -inf  ;;  %v1861_v30 = vld [vmem:[%s2670_s0] ss:$0 sm:$0xff] }
 0x317   : > { %1150 = vmax.xlane.f32.xlu0 %v1149_v31 }
 0x39c   : > { %v985_v32 = vpop.xlane.xlu1 %984 }
 0x39d   : > { %v986_v33 = vsub.f32 %v981_v25, %v985_v32 }
 0x39f   : > { %v987_v34 = vmul.f32 1.442695, %v986_v33 }
 0x3a0   : > { %v1151_v35 = vpop.xlane.xlu0 %1150 }
 0x3a1   : > { %2073 = vpow2.f32 %v987_v34  ;;  %v1152_v36 = vsub.f32 %v1148_v29, %v1151_v35  ;;  %v1506_v29 = vld [vmem:[%s2389_s2] sm:$0xff] }
 0x3a3   : > { %v1153_v37 = vmul.f32 1.442695, %v1152_v36 }
 0x3a5   : > { %2075 = vpow2.f32 %v1153_v37 }
 0x3ae   : > { %v2074_v38 = vpop.eup %2073 }
 0x3af   : > { %v989_v39 = vsel %vm982_vm6, %v2074_v38, 0.0 }
 0x3b0   : > { %990 = vadd.xlane.f32.xlu0 %v989_v39 }
 0x3b2   : > { %v2076_v40 = vpop.eup %2075 }
 0x3b3   : > { %v1155_v41 = vsel %vm982_vm6, %v2076_v40, 0.0 }
 0x3b4   : > { %1156 = vadd.xlane.f32.xlu1 %v1155_v41 }
 0x3c5   : > { %1160 = vrot.lane.b32.xlu1 %v896_v19, %s2186_s20 }
 0x3c6   : > { %994 = vrot.lane.b32.xlu0 %v896_v19, %s2187_s8  ;;  %s2671_s8 = scalar_lea.vmem %s2609_s11, %s2348_s21 }
 0x3c7   : > { %v1863_v35 = vld [vmem:[%s2671_s8] ss:$0 sm:$0xff] }
 0x439   : > { %v991_v42 = vpop.xlane.xlu0 %990 }
 0x43a   : > { %2077 = vrcp.f32 %v991_v42 }
 0x43d   : > { %v1157_v43 = vpop.xlane.xlu1 %1156  ;;  %v995_v44 = vpop.permute.xlu0 %994 }
 0x43e   : > { %2079 = vrcp.f32 %v1157_v43  ;;  %1935 = vmatpush3.msra.mxu1 %v995_v44 }
 0x43f   : > { %1944 = vmatprep.subr.mxu1 %v2181_v12 }
 0x441   : > { %v1161_v47 = vpop.permute.xlu1 %1160 }
 0x447   : > { %v2078_v45 = vpop.eup %2077 }
 0x448   : > { %v993_v46 = vmul.f32 %v2078_v45, %v2074_v38 }
 0x44a   : > { %1937 = vmatmul.mubr.msk.f32.vlgmr.msra.gmra.mxu1 %vm982_vm6, %v993_v46 }
 0x44b   : > { %v2080_v48 = vpop.eup %2079  ;;  %1945 = vmatpush3.msra.mxu1 %v1161_v47  ;;  %1946 = vmatprep.mubr.msk.f32.mxu1 %vm2182_vm3, %v2181_v12 }
 0x44c   : > { %v1159_v49 = vmul.f32 %v2080_v48, %v2076_v40  ;;  %1956 = vmatprep.subr.mxu1 %v2181_v12 }
 0x44e   : > { %1947 = vmatmul.mubr.msk.f32.vlgmr.msra.gmra.mxu1 %vm982_vm6, %v1159_v49  ;;  %v1865_v49 = vld [vmem:[%s716_s4] ss:$0 sm:$0xff] }
 0x44f   : > { %1957 = vmatpush3.msra.mxu1 %v900_v50  ;;  %1960 = vmatprep.mubr.msk.f32.mxu1 %vm2182_vm3, %v2181_v12 }
 0x450   : > { %1958 = vmatprep.subr.mxu1 %v2181_v12 }
 0x451   : > { %1959 = vmatpush3.msra.mxu1 %v899_v51  ;;  %v1866_v51 = vld [vmem:[%s719_s18] ss:$0 sm:$0xff] }
 0x452   : > { %1974 = vmatprep.subr.mxu1 %v2181_v12 }
 0x50a   : > { %v1066_v54 = vpop.f32.mrf.mxu1 }
 0x50b   : > { %1961 = vmatmul.mubr.msk.f32.vlgmr.msra.gmra.mxu1 %vm906_vm5, %v1066_v54 }
 0x50c   : > { %v1938_v55 = vpop.f32.mrf.mxu1  ;;  %1990 = vmatprep.mubr.msk.f32.mxu1 %vm2182_vm3, %v2181_v12  ;;  %1975 = vmatpush3.msra.mxu1 %v1513_v13 }
 0x50d   : > { %1976 = vmatprep.subr.mxu1 %v2181_v12 }
 0x50e   : > { %v1232_v56 = vpop.f32.mrf.mxu1  ;;  %1977 = vmatpush3.msra.mxu1 %v1512_v14 }
 0x50f   : > { %1954 = vmatmul.mubr.msk.f32.vlgmr.msra.gmra.mxu0 %vm906_vm5, %v1232_v56  ;;  %1978 = vmatprep.subr.mxu1 %v2181_v12 }
 0x510   : > { %v1948_v57 = vpop.f32.mrf.mxu1  ;;  %1971 = vmatprep.mubr.msk.f32.mxu0 %vm2182_vm3, %v2181_v12  ;;  %1964 = vmatpush3.msra.mxu0 %v1424_v8 }
 0x511   : > { %1965 = vmatprep.subr.mxu0 %v2181_v12  ;;  %1979 = vmatpush3.msra.mxu1 %v1511_v15 }
 0x512   : > { %1966 = vmatpush3.msra.mxu0 %v1423_v9  ;;  %1980 = vmatprep.subr.mxu1 %v2181_v12 }
 0x513   : > { %1967 = vmatprep.subr.mxu0 %v2181_v12 }
 0x514   : > { %1968 = vmatpush3.msra.mxu0 %v1422_v10 }
 0x515   : > { %1969 = vmatprep.subr.mxu0 %v2181_v12 }
 0x516   : > { %1970 = vmatpush3.msra.mxu0 %v1421_v11 }
 0x5cb   : > { %v1378_v58 = vpop.f32.mrf.mxu1 }
 0x5cd   : > { %v1962_v59 = vpop.f32.mrf.mxu1 }
 0x5cf   : > { %v1305_v60 = vpop.f32.mrf.mxu0 }
 0x5d0   : > { %v1379_v62 = vadd.f32 %v1378_v58, %v1305_v60 }
 0x5d1   : > { %v1955_v63 = vpop.f32.mrf.mxu0 }
 0x5d2   : > { %v1389_v0 = vadd.f32 %v1858_v61, %v1379_v62 }
 0x5d4   : > { %v1392_v1 = vadd.f32 %v1389_v0, %v2436_v16  ;;  %v1510_v16 = vld [vmem:[%s2389_s2 + $0x20] sm:$0xff] }
 0x5d5   : > { %1981 = vmatpush3.msra.mxu1 %v1510_v16 }
 0x5d6   : > { %v1393_v2 = vsel %vm825_vm4, %v1392_v1, 0.0  ;;  %1982 = vmatprep.subr.mxu1 %v2181_v12 }
 0x5d7   : > { %1394 = vadd.xlane.f32.xlu1 %v1393_v2  ;;  %1983 = vmatpush3.msra.mxu1 %v1509_v17 }
 0x5d8   : > { %1984 = vmatprep.subr.mxu1 %v2181_v12 }
 0x5d9   : > { %1985 = vmatpush3.msra.mxu1 %v1508_v27 }
 0x5da   : > { %1986 = vmatprep.subr.mxu1 %v2181_v12 }
 0x5db   : > { %1987 = vmatpush3.msra.mxu1 %v1507_v28 }
 0x5dc   : > { %1988 = vmatprep.subr.mxu1 %v2181_v12 }
 0x5dd   : > { %1989 = vmatpush3.msra.mxu1 %v1506_v29 }
 0x660   : > { %v1395_v3 = vpop.xlane.xlu1 %1394 }
 0x661   : > { %v1397_v4 = vmul.f32 0.03125, %v1395_v3 }
 0x663   : > { %v1398_v5 = vsub.f32 %v1392_v1, %v1397_v4 }
 0x665   : > { %v1399_v6 = vmul.f32 %v1398_v5, %v1398_v5 }
 0x667   : > { %v1400_v7 = vsel %vm825_vm4, %v1399_v6, 0.0 }
 0x668   : > { %1401 = vadd.xlane.f32.xlu0 %v1400_v7 }
 0x6f1   : > { %v1402_v18 = vpop.xlane.xlu0 %1401 }
 0x6f2   : > { %v1403_v19 = vmul.f32 0.03125, %v1402_v18 }
 0x6f4   : > { %v1404_v20 = vadd.f32 1e-05, %v1403_v19 }
 0x6f6   : > { %2081 = vrsqrt.f32 %v1404_v20 }
 0x703   : > { %v2082_v21 = vpop.eup %2081 }
 0x704   : > { %v1406_v23 = vmul.f32 %v2082_v21, %v1398_v5 }
 0x706   : > { %v1413_v25 = vmul.f32 %v1859_v22, %v1406_v23 }
 0x708   : > { %v1420_v26 = vadd.f32 %v1860_v24, %v1413_v25 }
 0x70a   : > { %1972 = vmatmul.mubr.msk.f32.vlgmr.msra.gmra.mxu0 %vm825_vm4, %v1420_v26 }
 0x7ca   : > { %v1501_v31 = vpop.f32.mrf.mxu0 }
 0x7cb   : > { %v1502_v32 = vadd.f32 %v1861_v30, %v1501_v31 }
 0x7cc   : > { %v1973_v33 = vpop.f32.mrf.mxu0 }
 0x7cd   : > { %v1505_v34 = vmax.f32 %v1502_v32, 0.0 }
 0x7cf   : > { %1991 = vmatmul.mubr.msk.f32.vlgmr.msra.gmra.mxu1 %vm1521_vm7, %v1505_v34 }
 0x88f   : > { %v1591_v36 = vpop.f32.mrf.mxu1 }
 0x890   : > { %v1592_v37 = vadd.f32 %v1863_v35, %v1591_v36 }
 0x891   : > { %v1992_v12 = vpop.f32.mrf.mxu1 }
 0x892   : > { %v1597_v38 = vadd.f32 %v1592_v37, %v1420_v26 }
 0x894   : > { %v1598_v39 = vsel %vm825_vm4, %v1597_v38, 0.0 }
 0x895   : > { %1599 = vadd.xlane.f32.xlu0 %v1598_v39 }
 0x91e   : > { %v1600_v40 = vpop.xlane.xlu0 %1599 }
 0x91f   : > { %v1601_v41 = vmul.f32 0.03125, %v1600_v40 }
 0x921   : > { %v1602_v42 = vsub.f32 %v1597_v38, %v1601_v41 }
 0x923   : > { %v1603_v43 = vmul.f32 %v1602_v42, %v1602_v42 }
 0x925   : > { %v1604_v44 = vsel %vm825_vm4, %v1603_v43, 0.0 }
 0x926   : > { %1605 = vadd.xlane.f32.xlu1 %v1604_v44 }
 0x9af   : > { %v1606_v45 = vpop.xlane.xlu1 %1605 }
 0x9b0   : > { %v1607_v46 = vmul.f32 0.03125, %v1606_v45 }
 0x9b2   : > { %v1608_v47 = vadd.f32 1e-05, %v1607_v46 }
 0x9b4   : > { %2083 = vrsqrt.f32 %v1608_v47 }
 0x9c1   : > { %v2084_v48 = vpop.eup %2083 }
 0x9c2   : > { %v1610_v50 = vmul.f32 %v2084_v48, %v1602_v42 }
 0x9c4   : > { %v1617_v52 = vmul.f32 %v1865_v49, %v1610_v50  ;;  %1629 = sbr.rel (%p1867_p1) target bundleno = 2507 (0x9cb), region = 92 }
 0x9c6   : > { %v1624_v53 = vadd.f32 %v1866_v51, %v1617_v52 }
 0x9c8   : > { %1625 = vst.msk [vmem:[#allocation2] sm:$0xff] %vm825_vm4, %v1624_v53 }
 0x9c9   : > { %vm1630_vm8 = vcmask 261127  }
 0x9ca   : > { %1631 = vst.msk [vmem:[%s2409_s6 - $0x7] sm:$0x80] %vm1630_vm8, %v1624_v53 }
 0x9cb PF: > { %s2673_s29 = sld [smem:[#allocation9_spill]]  ;;  %s1645_s24 = sshll.u32 %s2409_s6, 4  ;;  %s1646_s24 = int_to_ptr.vmem [resolvable:$true] %s1645_s24 }
 0x9cc   : > { %s2675_s21 = sld [smem:[#allocation26_spill]]  ;;  %s2677_s28 = sand.u32 1, %s2153_s22  }
 0x9cd   : > { %s1633_s26 = scalar_lea.sflag [#allocation4], %s2677_s28  ;;  %s2085_s17 = scalar_lea.vmem %s1646_s24, 16 }
 0x9ce   : > { %p2086_p2 = scmp.ne.s32.totalorder %s1646_s24, %s2085_s17  ;;  %s2188_s20 = smov [#allocation3]  }
 0x9cf   : > { %s2089_s8 = sshll.u32 %s2188_s20, 4  ;;  %s2090_s8 = int_to_ptr.vmem [resolvable:$false] %s2089_s8 }
 0x9d0   : > { %p2087_p4 = pnand %p2086_p2, %p2323_p3  ;;  %s2091_s2 = scalar_lea.vmem %s2090_s8, 32 }
 0x9d1   : > { %s1868_s16 = sshll.u32 %s2673_s29, 4  ;;  %p2092_p6 = scmp.lt.s32.totalorder %s1646_s24, %s2090_s8 }
 0x9d2   : > { %s2676_s0 = smov %s2675_s21  ;;  %s1643_s18 = scalar_lea.hbm %s2675_s21, %s1868_s16 }
 0x9d3   : > { %p2088_p5 = pneg %p2087_p4  ;;  %p2093_p7 = scmp.lt.s32.totalorder %s2091_s2, %s2085_s17 }
 0x9d5   : > { %p2094_p8 = por %p2093_p7, %p2092_p6 }
 0x9d7   : > { %p2095_p10 = pnand %p2094_p8, %p2088_p5 }
 0x9d9   : > { %2098 = shalt.err (!%p2095_p10)
}
 0x9da   : > { %s2099_s1 = scalar_lea.hbm %s1643_s18, 16  ;;  %s2103_s19 = scalar_lea.hbm %s2676_s0, 32 }
 0x9db   : > { %p2100_p11 = scmp.ne.s32.totalorder %s1643_s18, %s2099_s1  ;;  %p2104_p0 = scmp.lt.s32.totalorder %s1643_s18, %s2676_s0 }
 0x9dc   : > { %p2105_p1 = scmp.lt.s32.totalorder %s2103_s19, %s2099_s1 }
 0x9dd   : > { %p2101_p12 = pnand %p2100_p11, %p2323_p3 }
 0x9de   : > { %p2106_p2 = por %p2105_p1, %p2104_p0 }
 0x9df   : > { %p2102_p13 = pneg %p2101_p12 }
 0x9e1   : > { %p2107_p4 = pnand %p2106_p2, %p2102_p13 }
 0x9e3   : > { %2110 = shalt.err (!%p2107_p4)
}
 0x9e4   : > { %1993 = dma.vmem_to_hbm [thread:$0]  (%p2323_p3), %s1646_s24, 16, %s1643_s18, %s1633_s26  }
 0x9e5 PF: > { %s2678_s16 = sld [smem:[#allocation12_spill]] }
 0x9e6   : > { %s2679_s30 = sld [smem:[#allocation6_spill]] }
 0x9eb   : > { %p1999_p5 = scmp.ge.s32.totalorder %s2678_s16, 2 }
 0x9ec   : > { %s1657_s21 = sand.u32 1, %s2679_s30  }
 0x9ed   : > { %p1996_p6 = pnand %p1999_p5, %p2333_p9  ;;  %s1658_s28 = scalar_lea.sflag [#allocation4], %s1657_s21 }
 0x9ef   : > { %p1997_p7 = pneg %p1996_p6 }
 0x9f1   : > { %2144 = dma.done.wait (%p1997_p7), %s1658_s28, 16  }
 0x9f2   : > { %2146 = vsyncadd (%p1997_p7), %s1658_s28, 4294967280  ;;  %s29_s28 = sadd.s32 1, %s2678_s16   ;;  %s2681_s17 = sld [smem:[#allocation7_spill]] }
 0x9f3   : > { %p26_p8 = scmp.ge.s32.totalorder %s29_s28, 6   ;;  %s2682_s23 = sld [smem:[#allocation17_spill]] }
 0x9f4   : > { %s2683_s24 = sld [smem:[#allocation10_spill]]  ;;  %s2687_s21 = smov %s2153_s22 }
 0x9f5   : > { %s2684_s25 = sld [smem:[#allocation11_spill]] }
 0x9f6   : > { %s2685_s26 = sld [smem:[#allocation13_spill]] }
 0x9f7   : > { %s2686_s4 = sld [smem:[#allocation15_spill]] }
 0x9f8   : > { %s2688_s22 = smov %s2681_s17 }
 0x9f9   :  { %28 = sbr.rel (!%p26_p8) target bundleno = 15 (0xf), region = 163 }
 0x9fd   : > { %2689 = sst [smem:[#allocation6_spill]] %s2686_s4 }
 0x9fe   :  { %1662 = vsyncpa [#allocation4], 1 }
 0x9ff   :  { %1664 = vsyncpa [#allocation4 + $0x1], 1 }

</bundles_post_ra>
